<compile_context>
chip_gen: v7x
topology: tpu7x:2x2x1
jax: 0.10.0
libtpu: 0.0.40
codegen_flags: <defaults>
</compile_context>

<pallas_src>
import numpy as np
from numpy import sin, cos, tan, pi, arcsin, arctan
from functools import lru_cache, partial

import jax
import jax.numpy as jnp
from jax.experimental import pallas as pl
from jax.experimental.pallas import tpu as pltpu


# ----------------------------------------------------------------------------
# Host-side (numpy) grid generation — verbatim port of the PyTorch module glue
# ----------------------------------------------------------------------------
@lru_cache(None)
def get_xy(delta_phi, delta_theta):
    return np.array([
        [(-tan(delta_theta), 1 / cos(delta_theta) * tan(delta_phi)),
         (0, tan(delta_phi)),
         (tan(delta_theta), 1 / cos(delta_theta) * tan(delta_phi))],
        [(-tan(delta_theta), 0),
         (1, 1),
         (tan(delta_theta), 0)],
        [(-tan(delta_theta), -1 / cos(delta_theta) * tan(delta_phi)),
         (0, -tan(delta_phi)),
         (tan(delta_theta), -1 / cos(delta_theta) * tan(delta_phi))],
    ])


@lru_cache(None)
def cal_index(h, w, img_r, img_c):
    phi = -((img_r + 0.5) / h * pi - pi / 2)
    theta = (img_c + 0.5) / w * 2 * pi - pi
    delta_phi = pi / h
    delta_theta = 2 * pi / w
    xys = get_xy(delta_phi, delta_theta)
    x = xys[..., 0]
    y = xys[..., 1]
    rho = np.sqrt(x ** 2 + y ** 2)
    v = arctan(rho)
    new_phi = arcsin(cos(v) * sin(phi) + y * sin(v) * cos(phi) / rho)
    new_theta = theta + arctan(
        x * sin(v) / (rho * cos(phi) * cos(v) - y * sin(phi) * sin(v)))
    new_r = (-new_phi + pi / 2) * h / pi - 0.5
    new_c = (new_theta + pi) * w / 2 / pi - 0.5
    new_c = (new_c + w) % w
    new_result = np.stack([new_r, new_c], axis=-1)
    new_result[1, 1] = (img_r, img_c)
    return new_result


@lru_cache(None)
def _gen_filters_coordinates(h, w, stride):
    co = np.array([[cal_index(h, w, i, j) for j in range(0, w, stride)]
                   for i in range(0, h, stride)])
    return np.ascontiguousarray(co.transpose([4, 0, 1, 2, 3]))


def gen_filters_coordinates(h, w, stride=1):
    assert isinstance(h, int) and isinstance(w, int)
    return _gen_filters_coordinates(h, w, stride).copy()


def gen_grid_coordinates(h, w, stride=1):
    coordinates = gen_filters_coordinates(h, w, stride).copy()
    coordinates[0] = coordinates[0] * 2 / h - 1
    coordinates[1] = coordinates[1] * 2 / w - 1
    coordinates = coordinates[::-1]
    coordinates = coordinates.transpose(1, 3, 2, 4, 0)
    sz = coordinates.shape
    coordinates = coordinates.reshape(1, sz[0] * sz[1], sz[2] * sz[3], sz[4])
    return coordinates.copy()


# ----------------------------------------------------------------------------
# Bake grid_sample(bilinear, zeros, align_corners=False) into 9 dense matrices
# ----------------------------------------------------------------------------
@lru_cache(None)
def _build_sampling_matrices_np(h, w, stride):
    grid = gen_grid_coordinates(h, w, stride)[0]       # (3*Hs, 3*Ws, 2): (x, y)
    Hout, Wout, _ = grid.shape
    Hp, Wp = Hout // 3, Wout // 3
    S = np.zeros((9, h * w, Hp * Wp), dtype=np.float32)
    for gr in range(Hout):
        for gc in range(Wout):
            gx, gy = grid[gr, gc]
            ix = ((gx + 1.0) * w - 1.0) / 2.0
            iy = ((gy + 1.0) * h - 1.0) / 2.0
            x0 = int(np.floor(ix))
            y0 = int(np.floor(iy))
            wx1 = ix - x0
            wy1 = iy - y0
            t = (gr % 3) * 3 + (gc % 3)                 # conv tap (kr*3 + kc)
            out_idx = (gr // 3) * Wp + (gc // 3)
            for yy, wy in ((y0, 1.0 - wy1), (y0 + 1, wy1)):
                for xx, wx in ((x0, 1.0 - wx1), (x0 + 1, wx1)):
                    if 0 <= yy < h and 0 <= xx < w:
                        S[t, yy * w + xx, out_idx] += wy * wx
    return S, Hp, Wp


def _round_up(x, m):
    return -(-x // m) * m


_TK_TARGET = 512    # reduction-tile target (multiple of 128)
_TN_TARGET = 512    # output-lane-tile target (multiple of 128)


def _choose_tiles(K, Nout):
    """Pick (K_pad, tk, Nout_pad, tn): lane-aligned, and >=2 output tiles for
    the parallel grid axis (v7x megacore) whenever the output is big enough."""
    K_128 = _round_up(K, 128)
    tk = min(_TK_TARGET, K_128)
    K_pad = _round_up(K, tk)

    N_128 = _round_up(Nout, 128)
    if N_128 <= 128:
        tn, Nout_pad = 128, 128
    else:
        tn = min(_TN_TARGET, _round_up(N_128 // 2, 128))
        Nout_pad = _round_up(Nout, tn)
    return K_pad, tk, Nout_pad, tn


@lru_cache(None)
def _prepare_sampling_matrices(h, w, stride):
    """Cached, device-resident, padded bf16 sampling matrices."""
    S_np, Hp, Wp = _build_sampling_matrices_np(h, w, stride)
    K, Nout = h * w, Hp * Wp
    K_pad, tk, Nout_pad, tn = _choose_tiles(K, Nout)
    Sp = np.zeros((9, K_pad, Nout_pad), dtype=np.float32)
    Sp[:, :K, :Nout] = S_np
    S_dev = jnp.asarray(Sp, dtype=jnp.bfloat16)         # cached on device
    return S_dev, Hp, Wp, K_pad, tk, Nout_pad, tn


# ----------------------------------------------------------------------------
# Pallas kernel — grid (j, k, t):  acc += W[t] @ (X[:, k] @ S[t, k, j])
# ----------------------------------------------------------------------------
def _sphere_conv_kernel(x_ref, s_ref, w_ref, b_ref, o_ref, acc_ref,
                        *, n_batch, cin_pad, cout_pad):
    k = pl.program_id(1)
    t = pl.program_id(2)
    nk = pl.num_programs(1)
    nt = pl.num_programs(2)

    @pl.when((k == 0) & (t == 0))
    def _init():
        # Bias folded into the accumulator init (no epilogue add).
        acc_ref[...] = jnp.broadcast_to(b_ref[...], acc_ref.shape)

    # Stage 1: spherical bilinear resample of this K-tile for tap t (bf16 MXU).
    z = jnp.dot(x_ref[...], s_ref[...], preferred_element_type=jnp.float32)
    zb = z.astype(jnp.bfloat16)

    # Stage 2: apply the 3x3 tap weights per batch sample (bf16 MXU, f32 acc).
    # w_ref holds all 9 taps resident in VMEM (fetched once); index tap t.
    w_t = w_ref[t]                                      # (cout_pad, cin_pad)
    parts = []
    for n in range(n_batch):                            # small static unroll
        zn = zb[n * cin_pad:(n + 1) * cin_pad, :]       # 16-row aligned slice
        parts.append(jnp.dot(w_t, zn, preferred_element_type=jnp.float32))
    acc_ref[...] += jnp.concatenate(parts, axis=0)

    @pl.when((k == nk - 1) & (t == nt - 1))
    def _store():
        o_ref[...] = acc_ref[...].astype(o_ref.dtype)


def sphere_conv2d(x, weight, bias=None, stride=1, mode='bilinear'):
    """x: (N, C_in, H, W) f32; weight: (C_out, C_in, 3, 3); bias: (C_out,) or None.
    Returns (N, C_out, Hp, Wp) — same as SphereConv2D.forward."""
    # TODO(synk): only mode='bilinear' (the module default) is implemented;
    # 'nearest' would need a different sampling-matrix build.
    assert mode == 'bilinear', "only bilinear grid_sample is supported"
    N, C_in, H, W = x.shape
    C_out = weight.shape[0]
    if bias is None:
        bias = jnp.zeros((C_out,), jnp.float32)

    S_dev, Hp, Wp, K_pad, tk, Nout_pad, tn = _prepare_sampling_matrices(H, W, stride)
    K, Nout = H * W, Hp * Wp

    cin_pad = _round_up(C_in, 16)        # bf16 sublane packing (16 rows / tile)
    cout_pad = _round_up(C_out, 8)       # f32 accumulator rows
    Mx = N * cin_pad
    Mout = N * cout_pad

    # x: (N, C_in, H, W) -> (N*cin_pad, K_pad) bf16, batch-major channel rows.
    x2 = jnp.reshape(x, (N, C_in, K)).astype(jnp.bfloat16)
    x2 = jnp.pad(x2, ((0, 0), (0, cin_pad - C_in), (0, K_pad - K)))
    x2 = jnp.reshape(x2, (Mx, K_pad))

    # Conv weights per tap: (9, cout_pad, cin_pad) bf16 (no block-diag blowup).
    w9 = jnp.transpose(jnp.reshape(weight.astype(jnp.float32), (C_out, C_in, 9)),
                       (2, 0, 1))                                 # (9, C_out, C_in)
    w9 = jnp.pad(w9, ((0, 0), (0, cout_pad - C_out), (0, cin_pad - C_in)))
    w9 = w9.astype(jnp.bfloat16)

    # Bias column, replicated per batch sample: (N*cout_pad, 1) f32.
    b_col = jnp.pad(bias.astype(jnp.float32), (0, cout_pad - C_out))
    b_col = jnp.tile(b_col, (N,)).reshape(Mout, 1)

    J = Nout_pad // tn
    KT = K_pad // tk
    grid = (J, KT, 9)                    # tap axis innermost: x fetched once per (j, k)

    kernel = partial(_sphere_conv_kernel,
                     n_batch=N, cin_pad=cin_pad, cout_pad=cout_pad)

    flops = int(2 * 9 * Mx * K_pad * Nout_pad
                + 2 * 9 * KT * N * cout_pad * cin_pad * Nout_pad)
    bytes_accessed = int(J * Mx * K_pad * 2          # x (re-fetched per j sweep)
                         + 9 * K_pad * Nout_pad * 2  # S (dominant stream)
                         + 9 * cout_pad * cin_pad * 2
                         + Mout * 4
                         + Mout * Nout_pad * 4)

    # Explicit VMEM budget (double-buffered streams + resident acc/weights).
    vmem_need = (2 * tk * tn * 2
                 + 2 * Mx * tk * 2
                 + 2 * 9 * cout_pad * cin_pad * 2
                 + 2 * Mout * 128 * 4
                 + 2 * Mout * tn * 4
                 + Mout * tn * 4)
    vmem_limit = int(min(64 << 20, max(32 << 20, 2 * vmem_need)))

    out_full = pl.pallas_call(
        kernel,
        out_shape=jax.ShapeDtypeStruct((Mout, Nout_pad), jnp.float32),
        grid_spec=pltpu.PrefetchScalarGridSpec(
            num_scalar_prefetch=0,
            grid=grid,
            in_specs=[
                # x tile depends only on k -> fetched once per (j, k).
                pl.BlockSpec((Mx, tk), lambda j, k, t: (0, k)),
                # S is the dominant HBM stream: one (tk, tn) tile per step.
                pl.BlockSpec((None, tk, tn), lambda j, k, t: (t, k, j)),
                # All 9 tap weights resident (constant block index -> one DMA).
                pl.BlockSpec((9, cout_pad, cin_pad), lambda j, k, t: (0, 0, 0)),
                pl.BlockSpec((Mout, 1), lambda j, k, t: (0, 0)),
            ],
            out_specs=pl.BlockSpec((Mout, tn), lambda j, k, t: (0, j)),
            scratch_shapes=[pltpu.VMEM((Mout, tn), jnp.float32)],
        ),
        compiler_params=pltpu.CompilerParams(
            dimension_semantics=("parallel", "arbitrary", "arbitrary"),
            vmem_limit_bytes=vmem_limit),
        cost_estimate=pl.CostEstimate(
            flops=flops, transcendentals=0, bytes_accessed=bytes_accessed),
    )(x2, S_dev, w9, b_col)

    out = out_full[:, :Nout].reshape(N, cout_pad, Nout)[:, :C_out, :]
    return out.reshape(N, C_out, Hp, Wp)


# ----------------------------------------------------------------------------
# Pure-numpy reference (grid_sample gather + conv2d stride 3), float64
# ----------------------------------------------------------------------------
def reference_numpy(x, weight, bias, stride=1):
    N, C, H, W = x.shape
    grid = gen_grid_coordinates(H, W, stride)[0]
    Hout, Wout, _ = grid.shape
    sampled = np.zeros((N, C, Hout, Wout), dtype=np.float64)
    for gr in range(Hout):
        for gc in range(Wout):
            gx, gy = grid[gr, gc]
            ix = ((gx + 1.0) * W - 1.0) / 2.0
            iy = ((gy + 1.0) * H - 1.0) / 2.0
            x0 = int(np.floor(ix)); y0 = int(np.floor(iy))
            wx1 = ix - x0; wy1 = iy - y0
            v = np.zeros((N, C), dtype=np.float64)
            for yy, wy in ((y0, 1.0 - wy1), (y0 + 1, wy1)):
                for xx, wx in ((x0, 1.0 - wx1), (x0 + 1, wx1)):
                    if 0 <= yy < H and 0 <= xx < W:
                        v += wy * wx * x[:, :, yy, xx]
            sampled[:, :, gr, gc] = v
    Hp, Wp = Hout // 3, Wout // 3
    patches = sampled.reshape(N, C, Hp, 3, Wp, 3)
    out = np.einsum('ncirjs,ocrs->noij', patches, weight)
    return out + bias[None, :, None, None]


if __name__ == "__main__":
    key = jax.random.PRNGKey(0)
    k1, k2, k3 = jax.random.split(key, 3)

    N, C_in, C_out, H, W = 2, 4, 8, 16, 16
    x = jax.random.normal(k1, (N, C_in, H, W), dtype=jnp.float32)
    bound = 1.0 / np.sqrt(C_in * 9)
    weight = jax.random.uniform(k2, (C_out, C_in, 3, 3), dtype=jnp.float32,
                                minval=-bound, maxval=bound)
    bias = jax.random.uniform(k3, (C_out,), dtype=jnp.float32,
                              minval=-bound, maxval=bound)

    out = sphere_conv2d(x, weight, bias, stride=1)
    out = jax.block_until_ready(out)

    ref = reference_numpy(np.asarray(x, dtype=np.float64),
                          np.asarray(weight, dtype=np.float64),
                          np.asarray(bias, dtype=np.float64), stride=1)
    assert out.shape == ref.shape, (out.shape, ref.shape)
    # x, S and the conv weights are streamed in bf16 (f32 accumulation).
    np.testing.assert_allclose(np.asarray(out), ref, rtol=3e-2, atol=3e-2)

    print("KERNEL_OK")
</pallas_src>

<mosaic_0001>
module attributes {stable_mosaic.version = 11 : i64} {
  func.func @_sphere_conv_kernel(%arg0: i32, %arg1: i32, %arg2: i32, %arg3: memref<32x256xbf16, #tpu.memory_space<vmem>>, %arg4: memref<1x256x128xbf16, #tpu.memory_space<vmem>>, %arg5: memref<9x8x16xbf16, #tpu.memory_space<vmem>>, %arg6: memref<16x1xf32, #tpu.memory_space<vmem>>, %arg7: memref<16x128xf32, #tpu.memory_space<vmem>>, %arg8: memref<16x128xf32, #tpu.memory_space<vmem>>) attributes {dimension_semantics = [#tpu.dimension_semantics<parallel>, #tpu.dimension_semantics<arbitrary>, #tpu.dimension_semantics<arbitrary>], iteration_bounds = array<i64: 2, 1, 9>, scalar_prefetch = 0 : i64, scratch_operands = 1 : i64, tpu.core_type = #tpu.core_type<tc>, window_params = [{transform_indices = @transform_0, window_bounds = array<i64: 32, 256>}, {transform_indices = @transform_1, window_bounds = array<i64: 1, 256, 128>}, {pipeline_mode = #tpu.pipeline_mode<synchronous>, transform_indices = @transform_2, window_bounds = array<i64: 9, 8, 16>}, {pipeline_mode = #tpu.pipeline_mode<synchronous>, transform_indices = @transform_3, window_bounds = array<i64: 16, 1>}, {transform_indices = @transform_4, window_bounds = array<i64: 16, 128>}]} {
    %c0_i32 = arith.constant 0 : i32
    %0 = arith.cmpi eq, %arg1, %c0_i32 : i32
    %c0_i32_0 = arith.constant 0 : i32
    %1 = arith.cmpi eq, %arg2, %c0_i32_0 : i32
    %2 = arith.andi %0, %1 : i1
    %3 = arith.extui %2 : i1 to i32
    %c0_i32_1 = arith.constant 0 : i32
    %4 = arith.cmpi ne, %3, %c0_i32_1 : i32
    scf.if %4 {
      %c0_16 = arith.constant 0 : index
      %c0_17 = arith.constant 0 : index
      %26 = vector.load %arg6[%c0_16, %c0_17] : memref<16x1xf32, #tpu.memory_space<vmem>>, vector<16x1xf32>
      %27 = vector.shape_cast %26 : vector<16x1xf32> to vector<16x1xf32>
      %28 = vector.broadcast %27 : vector<16x1xf32> to vector<16x128xf32>
      %c0_18 = arith.constant 0 : index
      %c0_19 = arith.constant 0 : index
      %29 = vector.load %arg8[%c0_18, %c0_19] : memref<16x128xf32, #tpu.memory_space<vmem>>, vector<16x128xf32>
      tpu.vector_store %arg8[%c0_18, %c0_19], %28 {strides = array<i32>} : memref<16x128xf32, #tpu.memory_space<vmem>>, vector<16x128xf32>,
    } else {
    }
    %c0 = arith.constant 0 : index
    %c0_2 = arith.constant 0 : index
    %5 = vector.load %arg3[%c0, %c0_2] : memref<32x256xbf16, #tpu.memory_space<vmem>>, vector<32x256xbf16>
    %c0_3 = arith.constant 0 : index
    %c0_4 = arith.constant 0 : index
    %c0_5 = arith.constant 0 : index
    %6 = vector.load %arg4[%c0_3, %c0_4, %c0_5] : memref<1x256x128xbf16, #tpu.memory_space<vmem>>, vector<1x256x128xbf16>
    %7 = vector.shape_cast %6 : vector<1x256x128xbf16> to vector<256x128xbf16>
    %cst = arith.constant dense<0.000000e+00> : vector<32x128xf32>
    %8 = tpu.matmul %5, %7, %cst {dimension_numbers = #tpu.dot_dimension_numbers<[1], [0], [0], [1], [0, 0, 1, 1], [], []>} : vector<32x256xbf16>, vector<256x128xbf16>, vector<32x128xf32> -> vector<32x128xf32>
    %9 = arith.truncf %8 : vector<32x128xf32> to vector<32x128xbf16>
    %10 = arith.index_cast %arg2 : i32 to index
    %c0_6 = arith.constant 0 : index
    %c0_7 = arith.constant 0 : index
    %11 = vector.load %arg5[%10, %c0_6, %c0_7] : memref<9x8x16xbf16, #tpu.memory_space<vmem>>, vector<1x8x16xbf16>
    %12 = vector.shape_cast %11 : vector<1x8x16xbf16> to vector<8x16xbf16>
    %13 = vector.extract_strided_slice %9 {offsets = [0, 0], sizes = [16, 128], strides = [1, 1]} : vector<32x128xbf16> to vector<16x128xbf16>
    %cst_8 = arith.constant dense<0.000000e+00> : vector<8x128xf32>
    %14 = tpu.matmul %12, %13, %cst_8 {dimension_numbers = #tpu.dot_dimension_numbers<[1], [0], [0], [1], [0, 0, 1, 1], [], []>} : vector<8x16xbf16>, vector<16x128xbf16>, vector<8x128xf32> -> vector<8x128xf32>
    %15 = vector.extract_strided_slice %9 {offsets = [16, 0], sizes = [16, 128], strides = [1, 1]} : vector<32x128xbf16> to vector<16x128xbf16>
    %cst_9 = arith.constant dense<0.000000e+00> : vector<8x128xf32>
    %16 = tpu.matmul %12, %15, %cst_9 {dimension_numbers = #tpu.dot_dimension_numbers<[1], [0], [0], [1], [0, 0, 1, 1], [], []>} : vector<8x16xbf16>, vector<16x128xbf16>, vector<8x128xf32> -> vector<8x128xf32>
    %c0_10 = arith.constant 0 : index
    %c0_11 = arith.constant 0 : index
    %17 = vector.load %arg8[%c0_10, %c0_11] : memref<16x128xf32, #tpu.memory_space<vmem>>, vector<16x128xf32>
    %18 = tpu.concatenate %14, %16 in 0 : vector<8x128xf32>, vector<8x128xf32> -> vector<16x128xf32>
    %19 = arith.addf %17, %18 : vector<16x128xf32>
    %c0_12 = arith.constant 0 : index
    %c0_13 = arith.constant 0 : index
    %20 = vector.load %arg8[%c0_12, %c0_13] : memref<16x128xf32, #tpu.memory_space<vmem>>, vector<16x128xf32>
    tpu.vector_store %arg8[%c0_12, %c0_13], %19 {strides = array<i32>} : memref<16x128xf32, #tpu.memory_space<vmem>>, vector<16x128xf32>,
    %c0_i32_14 = arith.constant 0 : i32
    %21 = arith.cmpi eq, %arg1, %c0_i32_14 : i32
    %c8_i32 = arith.constant 8 : i32
    %22 = arith.cmpi eq, %arg2, %c8_i32 : i32
    %23 = arith.andi %21, %22 : i1
    %24 = arith.extui %23 : i1 to i32
    %c0_i32_15 = arith.constant 0 : i32
    %25 = arith.cmpi ne, %24, %c0_i32_15 : i32
    scf.if %25 {
      %c0_16 = arith.constant 0 : index
      %c0_17 = arith.constant 0 : index
      %26 = vector.load %arg8[%c0_16, %c0_17] : memref<16x128xf32, #tpu.memory_space<vmem>>, vector<16x128xf32>
      %c0_18 = arith.constant 0 : index
      %c0_19 = arith.constant 0 : index
      %27 = vector.load %arg7[%c0_18, %c0_19] : memref<16x128xf32, #tpu.memory_space<vmem>>, vector<16x128xf32>
      tpu.vector_store %arg7[%c0_18, %c0_19], %26 {strides = array<i32>} : memref<16x128xf32, #tpu.memory_space<vmem>>, vector<16x128xf32>,
    } else {
    }
    return
  }
  func.func @transform_0(%arg0: i32, %arg1: i32, %arg2: i32) -> (i32, i32) {
    %c0_i32 = arith.constant 0 : i32
    %c0_i32_0 = arith.constant 0 : i32
    return %c0_i32, %arg1 : i32, i32
  }
  func.func @transform_1(%arg0: i32, %arg1: i32, %arg2: i32) -> (i32, i32, i32) {
    %c0_i32 = arith.constant 0 : i32
    return %arg2, %arg1, %arg0 : i32, i32, i32
  }
  func.func @transform_2(%arg0: i32, %arg1: i32, %arg2: i32) -> (i32, i32, i32) {
    %c0_i32 = arith.constant 0 : i32
    %c0_i32_0 = arith.constant 0 : i32
    %c0_i32_1 = arith.constant 0 : i32
    %c0_i32_2 = arith.constant 0 : i32
    return %c0_i32, %c0_i32_0, %c0_i32_1 : i32, i32, i32
  }
  func.func @transform_3(%arg0: i32, %arg1: i32, %arg2: i32) -> (i32, i32) {
    %c0_i32 = arith.constant 0 : i32
    %c0_i32_0 = arith.constant 0 : i32
    %c0_i32_1 = arith.constant 0 : i32
    return %c0_i32, %c0_i32_0 : i32, i32
  }
  func.func @transform_4(%arg0: i32, %arg1: i32, %arg2: i32) -> (i32, i32) {
    %c0_i32 = arith.constant 0 : i32
    %c0_i32_0 = arith.constant 0 : i32
    return %c0_i32, %arg0 : i32, i32
  }
}

</mosaic_0001>

<bundles_post_ra>
// kernel: tpu_custom_call.1
= control target key start
LH: loop header
LB: loop body
LE: loop exit
PB: predicated region body
PF: predicated region fallthrough
CT: control target
= control target key end

     0   :  { %s1583_s0 = inlined_call_operand.hbm [shape: bf16[32,256], index: 0, kind: input, shape index: {}]   ;;  %s1584_s1 = inlined_call_operand.hbm [shape: bf16[9,256,256], index: 1, kind: input, shape index: {}]   ;;  %s1585_s2 = inlined_call_operand.hbm [shape: bf16[9,8,16], index: 2, kind: input, shape index: {}]   ;;  %s1586_s3 = inlined_call_operand.vmem [shape: f32[16,1], index: 3, kind: input, shape index: {}]   ;;  %s1587_s4 = inlined_call_operand.hbm [shape: f32[16,256], index: 4, kind: output, shape index: {}]  }
   0x1   :  { %1601 = sst [smem:[#allocation18_spill]] %s1583_s0 }
   0x2   :  { %1602 = sst [smem:[#allocation19_spill]] %s1585_s2 }
   0x3   :  { %1603 = sst [smem:[#allocation20_spill]] %s1587_s4 }
   0x4   :  { %9 = vsyncpa [#allocation4], 0 }
   0x5   :  { %10 = vsyncpa [#allocation7], 0 }
   0x6   :  { %12 = vsyncpa [#allocation7 + $0x1], 0 }
   0x7   :  { %13 = vsyncpa [#allocation5], 0 }
   0x8   :  { %15 = vsyncpa [#allocation5 + $0x1], 0  ;;  %s1239_s15 = smov 0   ;;  %s1241_s16 = smov 0  }
   0x9   :  { %s1243_s17 = smov 0   ;;  %s1245_s18 = smov 0  }
   0xa   :  { %s1247_s19 = smov 0   ;;  %s1249_s20 = smov 0  }
   0xb   :  { %s1251_s21 = smov 0   ;;  %s1253_s22 = smov 0  }
   0xc   :  { %s1255_s23 = smov 0   ;;  %s1257_s24 = smov 0  }
   0xd   :  { %s1259_s25 = smov 0  }
   0xe LB: > { %1604 = sst [smem:[#allocation14_spill]] %s1158_s15  ;;  %s1293_s26 = sadd.s32 4294967295, %s1198_s25   ;;  %s1198_s25 = sphi %s1259_s25, %s21_s25   ;;  %s1194_s24 = sphi %s1257_s24, %s1645_s24   ;;  %s1190_s23 = sphi %s1255_s23, %s1644_s23   ;;  %s1186_s22 = sphi %s1253_s22, %s1643_s22   ;;  %s1182_s21 = sphi %s1251_s21, %s1642_s21   ;;  %s1178_s20 = sphi %s1249_s20, %s1641_s20   ;;  %s1174_s19 = sphi %s1247_s19, %s1640_s19   ;;  %s1170_s18 = sphi %s1245_s18, %s1639_s18   ;;  %s1166_s17 = sphi %s1243_s17, %s1638_s17   ;;  %s1162_s16 = sphi %s1241_s16, %s1637_s16   ;;  %s1158_s15 = sphi %s1239_s15, %s1636_s15  }
   0xf   : > { %1605 = sst [smem:[#allocation15_spill]] %s1186_s22  ;;  %s738_s27 = sadd.s32 4294967294, %s1198_s25  }
  0x10   : > { %p84_p0 = scmp.ne.s32.totalorder %s1178_s20, %s1174_s19  ;;  %p85_p1 = scmp.eq.s32.totalorder %s1198_s25, 0 }
  0x11   : > { %p90_p2 = scmp.ne.s32.totalorder %s1174_s19, %s1170_s18  ;;  %p1588_p3 = scmp.eq.s32.totalorder %s1293_s26, 0 }
  0x12   : > { %p1303_p4 = por %p85_p1, %p84_p0  ;;  %p155_p5 = scmp.ne.s32.totalorder %s1166_s17, %s1162_s16 }
  0x13   : > { %p1311_p6 = por %p1588_p3, %p90_p2  ;;  %p156_p7 = scmp.eq.s32.totalorder %s1293_s26, 17 }
  0x14   : > { %p161_p8 = scmp.ne.s32.totalorder %s1162_s16, %s1158_s15  ;;  %p162_p9 = scmp.eq.s32.totalorder %s738_s27, 17 }
  0x15   : > { %s1607_s5 = scalar_select %p1311_p6, 1, 0 }
  0x16   : > { %p1318_p10 = por %p156_p7, %p155_p5  ;;  %p739_p11 = scmp.ge.s32.totalorder %s1198_s25, 1 }
  0x17   : > { %p1323_p12 = por %p162_p9, %p161_p8  ;;  %p169_p13 = scmp.lt.s32.totalorder %s1198_s25, 19 }
  0x18   : > { %s1608_s6 = scalar_select %p1318_p10, 1, 0 }
  0x19   : > { %s1610_s7 = scalar_select %p1323_p12, 1, 0 }
  0x1a   : > { %1609 = sst [smem:[#allocation16_spill]] %s1608_s6  ;;  %p1328_p0 = pnand %p739_p11, %p169_p13 }
  0x1b   : > { %1611 = sst [smem:[#allocation17_spill]] %s1610_s7  ;;  %s1200_s9 = smov [#allocation8]  }
  0x1c   : > { %s1612_s8 = scalar_select %p1328_p0, 1, 0 }
  0x1d   : > { %s197_s10 = sshll.u32 %s1200_s9, 4  ;;  %p838_p1 = pneg %p1328_p0  ;;  %s198_s10 = int_to_ptr.vmem [resolvable:$true] %s197_s10 }
  0x1e   : > { %p855_p2 = scmp.lt.s32.totalorder %s1198_s25, 18  ;;  %s1615_s2 = sld [smem:[#allocation19_spill]] }
  0x1f   : > { %p1337_p5 = pnand %p838_p1, %p1588_p3 }
  0x20   : > { %p1343_p7 = pnand %p855_p2, %p1303_p4 }
  0x21   : > { %p984_p9 = pneg %p1337_p5 }
  0x22   : > { %s1614_s12 = scalar_select %p1343_p7, 1, 0 }
  0x24   : > { %s982_s18 = scalar_lea.hbm %s1615_s2, 576 }
  0x25   : > { %p983_p8 = scmp.ne.s32.totalorder %s1615_s2, %s982_s18  ;;  %p989_p4 = scmp.lt.u32.totalorder %s982_s18, %s1615_s2 }
  0x27   : > { %p985_p11 = pnand %p984_p9, %p983_p8 }
  0x29   : > { %p986_p13 = pneg %p985_p11 }
  0x2b   : > { %p991_p1 = pnand %p989_p4, %p986_p13 }
  0x2d   : > { %994 = shalt.err (!%p991_p1)
}
  0x2e   : > { %s995_s29 = scalar_lea.vmem %s198_s10, 576  ;;  %p1003_p10 = scmp.lt.s32.totalorder %s198_s10, %s198_s10 }
  0x2f   : > { %p996_p2 = scmp.ne.s32.totalorder %s198_s10, %s995_s29  ;;  %p1004_p6 = scmp.lt.s32.totalorder %s995_s29, %s995_s29 }
  0x31   : > { %p998_p3 = pnand %p996_p2, %p984_p9  ;;  %p1005_p0 = por %p1004_p6, %p1003_p10 }
  0x33   : > { %p999_p12 = pneg %p998_p3 }
  0x35   : > { %p1006_p7 = pnand %p1005_p0, %p999_p12 }
  0x37   : > { %1009 = shalt.err (!%p1006_p7)
}
  0x38   : > { %s1599_s13 = smov 64   ;;  %s1600_s14 = smov 4  }
  0x39   : > { %844 = dma.hbm_to_vmem [thread:$0]  (!%p1337_p5), %s1615_s2, 576, %s198_s10, [#allocation7], %s1599_s13, %s1599_s13, %s1600_s14  }
  0x3a   : > { %s1203_s27 = smov [#allocation3]   ;;  %s1616_s0 = sld [smem:[#allocation18_spill]] }
  0x3b   : > { %s184_s9 = sshll.u32 %s1203_s27, 4  ;;  %s185_s9 = int_to_ptr.vmem [resolvable:$true] %s184_s9 }
  0x40   : > { %s1010_s7 = scalar_lea.hbm %s1616_s0, 512 }
  0x41   : > { %p1011_p3 = scmp.ne.s32.totalorder %s1616_s0, %s1010_s7  ;;  %p1017_p12 = scmp.lt.u32.totalorder %s1010_s7, %s1616_s0 }
  0x43   : > { %p1013_p6 = pnand %p1011_p3, %p984_p9 }
  0x45   : > { %p1014_p10 = pneg %p1013_p6 }
  0x47   : > { %p1019_p0 = pnand %p1017_p12, %p1014_p10 }
  0x49   : > { %1022 = shalt.err (!%p1019_p0)
}
  0x4a   : > { %s1023_s10 = scalar_lea.vmem %s185_s9, 512  ;;  %p1031_p13 = scmp.lt.s32.totalorder %s185_s9, %s185_s9 }
  0x4b   : > { %p1024_p7 = scmp.ne.s32.totalorder %s185_s9, %s1023_s10  ;;  %p1032_p4 = scmp.lt.s32.totalorder %s1023_s10, %s1023_s10 }
  0x4d   : > { %p1026_p8 = pnand %p1024_p7, %p984_p9  ;;  %p1033_p1 = por %p1032_p4, %p1031_p13 }
  0x4f   : > { %p1027_p11 = pneg %p1026_p8 }
  0x51   : > { %p1034_p2 = pnand %p1033_p1, %p1027_p11 }
  0x53   : > { %1037 = shalt.err (!%p1034_p2)
}
  0x54   : > { %s1598_s4 = smov 128   ;;  %s1205_s15 = smov 8  }
  0x55   : > { %841 = dma.hbm_to_vmem [thread:$0]  (!%p1337_p5), %s1616_s0, 512, %s185_s9, [#allocation4], %s1598_s4, %s1598_s4, %s1205_s15  }
  0x56   : > { %s33_s7 = sadd.s32 1, %s1190_s23  ;;  %s40_s28 = sadd.s32 1, %s1194_s24 }
  0x57   : > { %p34_p9 = scmp.ge.s32.totalorder %s33_s7, 9  ;;  %s214_s18 = sand.u32 1, %s1198_s25  }
  0x58   : > { %s216_s27 = sand.u32 1, %s1178_s20   ;;  %s744_s29 = sshll.u32 %s1190_s23, 6 }
  0x59   : > { %s1647_s7 = smov (%p34_p9, %s33_s7), 0  ;;  %s1649_s28 = smov (!%p34_p9, %s40_s28), %s1194_s24 }
  0x5a   : > { %s70_s11 = ssub.s32 %s1190_s23, %s1647_s7  ;;  %p42_p3 = scmp.ge.s32.totalorder %s1649_s28, 2 }
  0x5b   : > { %s743_s30 = sshll.u32 %s216_s27, 7  ;;  %s226_s9 = sadd.s32 %s1194_s24, %s744_s29 }
  0x5c   : > { %s1651_s28 = smov (%p42_p3, %s1649_s28), 0  ;;  %s218_s10 = scalar_lea.vmem [#allocation6], %s743_s30 }
  0x5d   : > { %s229_s15 = sshll.u32 %s218_s10, 4  ;;  %s73_s22 = ssub.s32 %s1194_s24, %s1651_s28  ;;  %s1424_s15 = int_to_ptr.vmem [resolvable:$true] %s229_s15 }
  0x5e   : > { %s745_s6 = sshll.u32 %s226_s9, 6  ;;  %s74_s4 = sor.u32 %s73_s22, %s70_s11 }
  0x5f   : > { %p143_p5 = scmp.eq.s32.totalorder %s73_s22, 0  ;;  %p75_p6 = scmp.eq.s32.totalorder %s74_s4, 0 }
  0x60   : > { %s1412_s0 = scalar_lea.hbm %s1584_s1, %s745_s6  ;;  %s1617_s27 = sadd.s32 1, %s1166_s17 }
  0x61   : > { %s1417_s2 = scalar_select %p143_p5, %s1166_s17, %s1617_s27  }
  0x62   : > { %s1618_s29 = sadd.s32 1, %s1178_s20  ;;  %s1426_s11 = scalar_lea.sflag [#allocation7], %s214_s18 }
  0x63   : > { %s1422_s30 = scalar_select %p75_p6, %s1178_s20, %s1618_s29  }
  0x64   : > { %s1038_s4 = scalar_lea.hbm %s1412_s0, 2048  ;;  %p1619_p12 = scmp.ne.s32.totalorder %s1614_s12, 0 }
  0x65   : > { %p1039_p10 = scmp.ne.s32.totalorder %s1412_s0, %s1038_s4  ;;  %s1043_s9 = scalar_lea.hbm %s1584_s1, 36864 }
  0x66   : > { %p1040_p0 = pneg %p1619_p12  ;;  %p1044_p11 = scmp.lt.u32.totalorder %s1412_s0, %s1584_s1 }
  0x67   : > { %p1045_p13 = scmp.lt.u32.totalorder %s1043_s9, %s1038_s4  ;;  %p1047_p1 = scmp.lt.u32.totalorder %s1038_s4, %s1412_s0 }
  0x68   : > { %p1041_p7 = pnand %p1040_p0, %p1039_p10 }
  0x69   : > { %p1046_p4 = por %p1045_p13, %p1044_p11 }
  0x6a   : > { %p1042_p8 = pneg %p1041_p7 }
  0x6b   : > { %p1048_p2 = por %p1047_p1, %p1046_p4 }
  0x6d   : > { %p1049_p9 = pnand %p1048_p2, %p1042_p8 }
  0x6f   : > { %1052 = shalt.err (!%p1049_p9)
}
  0x70   : > { %s1053_s18 = scalar_lea.vmem %s1424_s15, 2048  ;;  %s1206_s6 = smov [#allocation6]  }
  0x71   : > { %p1054_p3 = scmp.ne.s32.totalorder %s1424_s15, %s1053_s18  ;;  %s1058_s27 = sshll.u32 %s1206_s6, 4  ;;  %s1059_s27 = int_to_ptr.vmem [resolvable:$false] %s1058_s27 }
  0x72   : > { %s1060_s29 = scalar_lea.vmem %s1059_s27, 4096  ;;  %p1061_p10 = scmp.lt.s32.totalorder %s1424_s15, %s1059_s27 }
  0x73   : > { %p1056_p5 = pnand %p1054_p3, %p1040_p0  ;;  %p1062_p7 = scmp.lt.s32.totalorder %s1060_s29, %s1053_s18 }
  0x75   : > { %p1057_p6 = pneg %p1056_p5  ;;  %p1063_p11 = por %p1062_p7, %p1061_p10 }
  0x77   : > { %p1064_p13 = pnand %p1063_p11, %p1057_p6 }
  0x79   : > { %1067 = shalt.err (!%p1064_p13)
}
  0x7a   : > { %s1620_s4 = smov 4   ;;  %s1621_s13 = smov 64  }
  0x7b   : > { %s1622_s14 = smov 128   ;;  %p1623_p0 = scmp.ne.s32.totalorder %s1612_s8, 0 }
  0x7c   : > { %848 = dma.hbm_to_vmem [thread:$0]  (!%p1619_p12), %s1412_s0, 2048, %s1424_s15, %s1426_s11, %s1622_s14, %s1621_s13, %s1620_s4  }
  0x7d   : > { %241 = sbr.rel (%p1623_p0) target bundleno = 792 (0x318), region = 36  ;;  %p1624_p8 = scmp.eq.s32.totalorder (!%p1623_p0), %s1293_s26, 0 }
  0x84   : > { %1141 = dma.done.wait (%p1624_p8), [#allocation4], 512   ;;  %p1625_p4 = pmov %p1624_p8 }
  0x85   : > { %s247_s12 = sand.u32 1, %s1293_s26   ;;  %s249_s9 = sand.u32 1, %s1174_s19  }
  0x86   : > { %1143 = vsyncadd (%p1625_p4), [#allocation4], 4294966784  ;;  %s748_s10 = sshll.u32 %s249_s9, 7  ;;  %s248_s22 = scalar_lea.sflag [#allocation7], %s247_s12 }
  0x87   : > { %s1465_s18 = scalar_lea.vmem [#allocation6], %s748_s10  ;;  %p1626_p1 = scmp.ne.s32.totalorder %s1607_s5, 0 }
  0x89   : > { %1145 = dma.done.wait (%p1626_p1), %s248_s22, 2048  }
  0x8a   : > { %1147 = vsyncadd (%p1626_p1), %s248_s22, 4294965248  ;;  %p1627_p12 = pmov %p1625_p4 }
  0x8b   : > { %p1628_p2 = pmov %p1625_p4 }
  0x8c   : > { %1149 = dma.done.wait (%p1627_p12), [#allocation7], 576  }
  0x8d   : > { %1151 = vsyncadd (%p1628_p2), [#allocation7], 4294966720  ;;  %s277_s0 = sand.u32 1, %s1162_s16   ;;  %p284_p9 = scmp.eq.s32.totalorder %s1182_s21, 0 }
  0x8e   : > { %s750_s8 = sshll.u32 %s277_s0, 4  ;;  %v289_v0 = vld [vmem:[%s1586_s3] sm:$0xff] (%p284_p9)  ;;  %v1207_v1 = vmov (%p284_p9), 0   ;;  %v290_v2 = vld [vmem:[%s1586_s3 + $0x8] sm:$0xff] (%p284_p9) }
  0x8f   : > { %s1479_s15 = scalar_lea.vmem [#allocation9], %s750_s8  ;;  %288 = sbr.rel (!%p284_p9) target bundleno = 277 (0x115), region = 52  ;;  %959 = vset.pattern.permute.xlu0 (%p284_p9), %v1207_v1 }
  0x90   : > { %293 = vperm.xlu0 (%p284_p9), %959, %v289_v0  }
  0x94   : > { %298 = vperm.xlu0 (%p284_p9), %959, %v290_v2  }
 0x10f   : > { %v294_v3 = vpop.permute.xlu0 %293 }
 0x110   : > { %301 = vst [vmem:[#allocation2] sm:$0xff] %v294_v3 }
 0x113   : > { %v299_v4 = vpop.permute.xlu0 %298 }
 0x114   : > { %302 = vst [vmem:[#allocation2 + $0x8] sm:$0xff] %v299_v4 }
 0x115 PF: > { %v960_v5 = vld [vmem:[%s1465_s18 + $0x40] sm:$0xff]   ;;  %v962_v7 = vld [vmem:[%s1465_s18 + $0x48] sm:$0xff]   ;;  %v964_v9 = vld [vmem:[%s1465_s18 + $0x50] sm:$0xff]   ;;  %v1208_v25 = vmov 0.0   ;;  %vm1209_vm0 = vmmov 0   ;;  %s772_s27 = sshll.u32 %s1182_s21, 2 }
 0x116   : > { %v961_v6 = vld [vmem:[%s1465_s18] sm:$0xff]   ;;  %782 = vmatprep.subr.bf16.mxu0 %v960_v5  ;;  %v963_v8 = vld [vmem:[%s1465_s18 + $0x8] sm:$0xff]   ;;  %v965_v10 = vld [vmem:[%s1465_s18 + $0x10] sm:$0xff]   ;;  %814 = vmatprep.subr.bf16.mxu1 %v1208_v25  ;;  %s507_s29 = scalar_lea.vmem [#allocation8], %s772_s27  ;;  %vm509_vm1 = vcmask 130048   ;;  %p599_p3 = scmp.eq.s32.totalorder %s1182_s21, 8 }
 0x117   : > { %783 = vmatpush3.bf16.msra.mxu0 %v961_v6  ;;  %v966_v11 = vld [vmem:[%s1465_s18 + $0x58] sm:$0xff]   ;;  %v968_v13 = vld [vmem:[%s1465_s18 + $0x60] sm:$0xff]   ;;  %v970_v15 = vld [vmem:[%s1465_s18 + $0x68] sm:$0xff]   ;;  %816 = vmatprep.mubr.msk.bf16.mxu1 %vm1209_vm0, %v1208_v25 }
 0x118   : > { %784 = vmatprep.subr.bf16.mxu0 %v962_v7  ;;  %v967_v12 = vld [vmem:[%s1465_s18 + $0x18] sm:$0xff]   ;;  %v969_v14 = vld [vmem:[%s1465_s18 + $0x20] sm:$0xff]   ;;  %v971_v17 = vld [vmem:[%s1465_s18 + $0x28] sm:$0xff]  }
 0x119   : > { %v978_v16 = vld [vmem:[#allocation3 + $0x4] ss:$8 sps:$4 sm:$0xff]   ;;  %v972_v18 = vld [vmem:[%s1465_s18 + $0x70] sm:$0xff]   ;;  %v974_v20 = vld [vmem:[%s1465_s18 + $0x78] sm:$0xff]  }
 0x11a   : > { %487 = vmatprep.mubr.bf16.mxu0 %v978_v16  ;;  %v973_v19 = vld [vmem:[%s1465_s18 + $0x30] sm:$0xff]   ;;  %v975_v21 = vld [vmem:[%s1465_s18 + $0x38] sm:$0xff]   ;;  %v976_v22 = vld [vmem:[#allocation3] ss:$8 sps:$4 sm:$0xff]  }
 0x11b   : > { %785 = vmatpush3.bf16.msra.mxu0 %v963_v8  ;;  %v979_v23 = vld [vmem:[#allocation3 + $0x14] ss:$8 sps:$4 sm:$0xff]   ;;  %v981_v24 = vld [vmem:[#allocation3 + $0x10] ss:$8 sps:$4 sm:$0xff]  }
 0x11c   : > { %786 = vmatprep.subr.bf16.mxu0 %v964_v9  ;;  %v508_v34 = vld [vmem:[%s507_s29] sm:$0xf]  ;;  %v594_v47 = vld [vmem:[#allocation2 + $0x8] sm:$0xff] }
 0x11d   : > { %v593_v41 = vld [vmem:[#allocation2] sm:$0xff] }
 0x11f   : > { %787 = vmatpush3.bf16.msra.mxu0 %v965_v10 }
 0x120   : > { %788 = vmatprep.subr.bf16.mxu0 %v966_v11 }
 0x123   : > { %789 = vmatpush3.bf16.msra.mxu0 %v967_v12 }
 0x124   : > { %790 = vmatprep.subr.bf16.mxu0 %v968_v13 }
 0x127   : > { %791 = vmatpush3.bf16.msra.mxu0 %v969_v14 }
 0x128   : > { %792 = vmatprep.subr.bf16.mxu0 %v970_v15 }
 0x12b   : > { %793 = vmatpush3.bf16.msra.mxu0 %v971_v17 }
 0x12c   : > { %794 = vmatprep.subr.bf16.mxu0 %v972_v18 }
 0x12f   : > { %795 = vmatpush3.bf16.msra.mxu0 %v973_v19 }
 0x130   : > { %796 = vmatprep.subr.bf16.mxu0 %v974_v20 }
 0x133   : > { %797 = vmatpush3.bf16.msra.mxu0 %v975_v21 }
 0x136   : > { %488 = vmatmul.mubr.bf16.vlgmr.msra.gmra.mrb[0].mxu0 %v976_v22 }
 0x137   : > { %495 = vmatprep.mubr.bf16.mxu0 %v979_v23 }
 0x13e   : > { %496 = vmatmul.mubr.bf16.gmra.mrb[4].mxu0 %v981_v24 }
 0x209   : > { %v798_v26 = vpop.f32.mrb[0].mxu0 }
 0x20a   : > { %v799_v27 = vpop.f32.mrb[1].mxu0 }
 0x20b   : > { %v800_v28 = vadd.f32 %v799_v27, %v798_v26  ;;  %v801_v29 = vpop.f32.mrb[2].mxu0 }
 0x20c   : > { %v802_v30 = vpop.f32.mrb[3].mxu0 }
 0x20d   : > { %v803_v31 = vadd.f32 %v802_v30, %v801_v29 }
 0x20f   : > { %v504_v32 = vpack.c.bf16 %v803_v31, %v800_v28 }
 0x211   : > { %v804_v33 = vpop.f32.mrb[4].mxu0  ;;  %815 = vmatpush3.bf16.msra.mxu1 %v504_v32 }
 0x212   : > { %v805_v35 = vpop.f32.mrb[5].mxu0  ;;  %820 = vmatprep.subr.bf16.mxu1 %v1208_v25 }
 0x213   : > { %v806_v36 = vadd.f32 %v805_v35, %v804_v33  ;;  %v807_v37 = vpop.f32.mrb[6].mxu0 }
 0x214   : > { %v808_v38 = vpop.f32.mrb[7].mxu0  ;;  %817 = vmatmul.mubr.msk.bf16.vlgmr.msra.gmra.mrb[0].mxu1 %vm509_vm1, %v508_v34 }
 0x215   : > { %v809_v39 = vadd.f32 %v808_v38, %v807_v37  ;;  %822 = vmatprep.mubr.msk.bf16.mxu1 %vm1209_vm0, %v1208_v25 }
 0x217   : > { %v505_v40 = vpack.c.bf16 %v809_v39, %v806_v36 }
 0x219   : > { %821 = vmatpush3.bf16.msra.mxu1 %v505_v40 }
 0x21c   : > { %823 = vmatmul.mubr.msk.bf16.vlgmr.msra.gmra.mrb[4].mxu1 %vm509_vm1, %v508_v34 }
 0x2e7   : > { %v547_v42 = vpop.f32.mrb[0].mxu1 }
 0x2e8   : > { %v595_v43 = vadd.f32 %v593_v41, %v547_v42  ;;  %v818_v44 = vpop.f32.mrb[1].mxu1 }
 0x2e9   : > { %v550_v45 = vpop.f32.mrb[2].mxu1 }
 0x2ea   : > { %597 = vst [vmem:[#allocation2] sm:$0xff] %v595_v43  ;;  %v819_v46 = vpop.f32.mrb[3].mxu1 }
 0x2ec   : > { %603 = sbr.rel (!%p599_p3) target bundleno = 763 (0x2fb), region = 56 }
 0x2ef   : > { %v587_v48 = vpop.f32.mrb[4].mxu1 }
 0x2f0   : > { %v596_v49 = vadd.f32 %v594_v47, %v587_v48  ;;  %v824_v50 = vpop.f32.mrb[5].mxu1 }
 0x2f1   : > { %v590_v51 = vpop.f32.mrb[6].mxu1  ;;  %v604_v53 = vld [vmem:[#allocation2] sm:$0xff] (%p599_p3) }
 0x2f2   : > { %598 = vst [vmem:[#allocation2 + $0x8] sm:$0xff] %v596_v49  ;;  %v825_v52 = vpop.f32.mrb[7].mxu1  ;;  %606 = vst [vmem:[%s1479_s15] sm:$0xff] (%p599_p3), %v604_v53 }
 0x2f9   : > { %v605_v54 = vld [vmem:[#allocation2 + $0x8] sm:$0xff] }
 0x2fa   : > { %607 = vst [vmem:[%s1479_s15 + $0x8] sm:$0xff] %v605_v54 }
 0x2fb PF: > { %s1629_s4 = sld [smem:[#allocation15_spill]]  ;;  %s1630_s13 = sld [smem:[#allocation16_spill]] }
 0x2fc   : > { %s1631_s10 = sld [smem:[#allocation20_spill]]  ;;  %s621_s18 = sshll.u32 %s1479_s15, 4  ;;  %s1518_s18 = int_to_ptr.vmem [resolvable:$true] %s621_s18 }
 0x2fd   : > { %s1522_s21 = scalar_lea.sflag [#allocation5], %s277_s0  ;;  %s1068_s8 = scalar_lea.vmem %s1518_s18, 256 }
 0x2fe   : > { %p1069_p5 = scmp.ne.s32.totalorder %s1518_s18, %s1068_s8  ;;  %s1210_s11 = smov [#allocation9]  }
 0x2ff   : > { %s1072_s6 = sshll.u32 %s1210_s11, 4  ;;  %s1073_s6 = int_to_ptr.vmem [resolvable:$false] %s1072_s6 }
 0x300   : > { %s1074_s5 = scalar_lea.vmem %s1073_s6, 512  ;;  %p1075_p11 = scmp.lt.s32.totalorder %s1518_s18, %s1073_s6 }
 0x301   : > { %s777_s14 = sshll.u32 %s1629_s4, 7  ;;  %p1632_p6 = scmp.ne.s32.totalorder %s1630_s13, 0 }
 0x302   : > { %s1515_s22 = scalar_lea.hbm %s1631_s10, %s777_s14  ;;  %p1076_p13 = scmp.lt.s32.totalorder %s1074_s5, %s1068_s8 }
 0x303   : > { %p1070_p10 = pnand %p1069_p5, %p1632_p6 }
 0x304   : > { %p1077_p0 = por %p1076_p13, %p1075_p11 }
 0x305   : > { %p1071_p7 = pneg %p1070_p10 }
 0x307   : > { %p1078_p8 = pnand %p1077_p0, %p1071_p7 }
 0x309   : > { %1081 = shalt.err (!%p1078_p8)
}
 0x30a   : > { %s1082_s0 = scalar_lea.hbm %s1515_s22, 256  ;;  %s1086_s27 = scalar_lea.hbm %s1631_s10, 512 }
 0x30b   : > { %p1083_p4 = scmp.ne.s32.totalorder %s1515_s22, %s1082_s0  ;;  %p1087_p2 = scmp.lt.u32.totalorder %s1515_s22, %s1631_s10 }
 0x30c   : > { %p1088_p9 = scmp.lt.u32.totalorder %s1086_s27, %s1082_s0  ;;  %p1090_p5 = scmp.lt.u32.totalorder %s1082_s0, %s1515_s22 }
 0x30d   : > { %p1084_p1 = pnand %p1083_p4, %p1632_p6 }
 0x30e   : > { %p1089_p3 = por %p1088_p9, %p1087_p2 }
 0x30f   : > { %p1085_p12 = pneg %p1084_p1 }
 0x310   : > { %p1091_p10 = por %p1090_p5, %p1089_p3 }
 0x312   : > { %p1092_p7 = pnand %p1091_p10, %p1085_p12 }
 0x314   : > { %1095 = shalt.err (!%p1092_p7)
}
 0x315   : > { %s1211_s14 = smov 128   ;;  %s1212_s12 = smov 256  }
 0x316   : > { %s1213_s9 = smov 8  }
 0x317   : > { %836 = dma.vmem_to_hbm [thread:$0]  (%p1632_p6), %s1518_s18, 256, %s1515_s22, %s1522_s21, %s1211_s14, %s1212_s12, %s1213_s9  }
 0x318 PF: > { %s1633_s8 = sld [smem:[#allocation14_spill]]  ;;  %s1634_s11 = sld [smem:[#allocation17_spill]] }
 0x319   : > { %p858_p11 = scmp.ge.s32.totalorder %s1198_s25, 2 }
 0x31e   : > { %s636_s6 = sand.u32 1, %s1633_s8   ;;  %p1635_p13 = scmp.ne.s32.totalorder %s1634_s11, 0 }
 0x31f   : > { %s637_s5 = scalar_lea.sflag [#allocation5], %s636_s6 }
 0x320   : > { %p850_p0 = pnand %p858_p11, %p1635_p13 }
 0x322   : > { %1153 = dma.done.wait (!%p850_p0), %s637_s5, 256  }
 0x323   : > { %1155 = vsyncadd (!%p850_p0), %s637_s5, 4294967040  ;;  %s21_s25 = sadd.s32 1, %s1198_s25   ;;  %s1636_s15 = smov %s1162_s16 }
 0x324   : > { %p18_p8 = scmp.ge.s32.totalorder %s21_s25, 20   ;;  %s1637_s16 = smov %s1166_s17 }
 0x325   : > { %s1638_s17 = smov %s1417_s2  ;;  %s1639_s18 = smov %s1174_s19 }
 0x326   : > { %s1640_s19 = smov %s1178_s20  ;;  %s1641_s20 = smov %s1422_s30 }
 0x327   : > { %s1642_s21 = smov %s1190_s23  ;;  %s1643_s22 = smov %s1194_s24 }
 0x328   : > { %s1644_s23 = smov %s1647_s7  ;;  %s1645_s24 = smov %s1651_s28 }
 0x329   :  { %20 = sbr.rel (!%p18_p8) target bundleno = 14 (0xe), region = 100 }
 0x330   :  { %642 = vsyncpa [#allocation4], 1 }
 0x331   :  { %644 = vsyncpa [#allocation4 + $0x1], 1 }
 0x332   :  { %645 = vsyncpa [#allocation7], 1 }
 0x333   :  { %647 = vsyncpa [#allocation7 + $0x1], 1 }
 0x334   :  { %648 = vsyncpa [#allocation5], 1 }
 0x335   :  { %650 = vsyncpa [#allocation5 + $0x1], 1 }

</bundles_post_ra>
